<compile_context>
chip_gen: v7x
topology: tpu7x:2x2x1
jax: 0.10.0
libtpu: 0.0.40
codegen_flags: <defaults>
</compile_context>

<pallas_src>
import jax
import jax.numpy as jnp
from jax.experimental import pallas as pl
from jax.experimental.pallas import tpu as pltpu


def _awl_kernel(x_ref, out_ref):
    # x_ref: (2, num) f32 in VMEM. Row 0 = losses, row 1 = params.
    # out_ref: (1, 1) f32 in SMEM (scalar result, no vector store / output DMA).
    x = x_ref[...]
    l = x[0:1, :]          # (1, num) losses
    p = x[1:2, :]          # (1, num) params
    p2 = p * p
    inv_p2 = pl.reciprocal(p2, approx=False)   # exact reciprocal on the EUP
    # 0.5 / p^2 * loss + log(1 + p^2), elementwise, then reduce over losses.
    term = 0.5 * l * inv_p2 + jnp.log1p(p2)
    out_ref[0, 0] = jnp.sum(term)


def automatic_weighted_loss(losses, params):
    """losses: (num,) f32, params: (num,) f32 -> scalar f32."""
    num = losses.shape[0]
    # Pack both operands into a single (2, num) array -> one input DMA.
    packed = jnp.stack(
        [losses.astype(jnp.float32), params.astype(jnp.float32)], axis=0
    )

    out = pl.pallas_call(
        _awl_kernel,
        out_shape=jax.ShapeDtypeStruct((1, 1), jnp.float32),
        # Block shape == full array shape, so the (8,128) divisibility rule
        # does not apply; single grid point, no pipelining needed.
        in_specs=[pl.BlockSpec((2, num), lambda: (0, 0))],
        # Scalar output lives in SMEM: skips the masked 1-lane vst and the
        # output writeback DMA entirely.
        out_specs=pl.BlockSpec(memory_space=pltpu.SMEM),
    )(packed)
    return out[0, 0]


if __name__ == "__main__":
    num = 2
    # Deterministic parameter init matching nn.Parameter(torch.ones(num)).
    params = jnp.ones((num,), dtype=jnp.float32)

    # Deterministic example "losses" (the module takes scalar losses as *args).
    key = jax.random.PRNGKey(0)
    losses = jax.random.uniform(key, (num,), dtype=jnp.float32, minval=0.1, maxval=2.0)

    result = automatic_weighted_loss(losses, params)
    result = jax.block_until_ready(result)

    # Pure-JAX reference check (original PyTorch formulation).
    p2 = params ** 2
    ref = jnp.sum(0.5 / p2 * losses + jnp.log(1.0 + p2))
    assert jnp.allclose(result, ref, rtol=1e-6, atol=1e-6), (result, ref)

    print("KERNEL_OK")
</pallas_src>

<mosaic_0001>
module attributes {stable_mosaic.version = 11 : i64} {
  func.func @_awl_kernel(%arg0: memref<2x2xf32, #tpu.memory_space<vmem>>, %arg1: memref<1x1xf32, #tpu.memory_space<smem>>) attributes {dimension_semantics = [], scalar_prefetch = 0 : i64, scratch_operands = 0 : i64, tpu.core_type = #tpu.core_type<tc>} {
    %c0 = arith.constant 0 : index
    %c0_0 = arith.constant 0 : index
    %0 = vector.load %arg0[%c0, %c0_0] : memref<2x2xf32, #tpu.memory_space<vmem>>, vector<2x2xf32>
    %1 = vector.extract_strided_slice %0 {offsets = [0, 0], sizes = [1, 2], strides = [1, 1]} : vector<2x2xf32> to vector<1x2xf32>
    %2 = vector.extract_strided_slice %0 {offsets = [1, 0], sizes = [1, 2], strides = [1, 1]} : vector<2x2xf32> to vector<1x2xf32>
    %3 = arith.mulf %2, %2 : vector<1x2xf32>
    %4 = tpu.reciprocal %3 : vector<1x2xf32> -> vector<1x2xf32>
    %cst = arith.constant 5.000000e-01 : f32
    %5 = vector.broadcast %cst : f32 to vector<1x2xf32>
    %6 = arith.mulf %5, %1 : vector<1x2xf32>
    %7 = arith.mulf %6, %4 : vector<1x2xf32>
    %8 = math.log1p %3 : vector<1x2xf32>
    %9 = arith.addf %7, %8 : vector<1x2xf32>
    %10 = vector.shape_cast %9 : vector<1x2xf32> to vector<1x1x2xf32>
    %cst_1 = arith.constant dense<0.000000e+00> : vector<1xf32>
    %11 = vector.multi_reduction <add>, %10, %cst_1 [1, 2] : vector<1x1x2xf32> to vector<1xf32>
    %12 = vector.shape_cast %11 : vector<1xf32> to vector<1x1x1xf32>
    %13 = vector.extract %12[0, 0, 0] : f32 from vector<1x1x1xf32>
    %c0_2 = arith.constant 0 : index
    %c0_3 = arith.constant 0 : index
    %14 = memref.load %arg1[%c0_2, %c0_3] : memref<1x1xf32, #tpu.memory_space<smem>>
    memref.store %13, %arg1[%c0_2, %c0_3] : memref<1x1xf32, #tpu.memory_space<smem>>
    return
  }
}

</mosaic_0001>

<bundles_post_ra>
// kernel: tpu_custom_call.1
= control target key start
LH: loop header
LB: loop body
LE: loop exit
PB: predicated region body
PF: predicated region fallthrough
CT: control target
= control target key end

     0   :  { %6 = vsyncpa [#allocation3], 0  ;;  %s149_s0 = inlined_call_operand.hbm [shape: f32[2,2], index: 0, kind: input, shape index: {}]   ;;  %s150_s1 = inlined_call_operand.hbm [shape: f32[1,1], index: 1, kind: output, shape index: {}]  }
   0x1   :  { %7 = vsyncpa [#allocation4], 0  ;;  %s113_s6 = smov [#allocation2]   ;;  %s77_s10 = scalar_lea.hbm %s149_s0, 32 }
   0x2   :  { %s14_s7 = sshll.u32 %s113_s6, 4  ;;  %p78_p0 = scmp.ne.s32.totalorder %s149_s0, %s77_s10  ;;  %s15_s7 = int_to_ptr.vmem [resolvable:$true] %s14_s7 }
   0x3   :  { %p81_p1 = scmp.lt.u32.totalorder %s77_s10, %s149_s0 }
   0x5   :  { %p83_p2 = pnand %p81_p1, %p78_p0 }
   0x7   :  { %86 = shalt.err (!%p83_p2)
}
   0x8   :  { %s87_s15 = scalar_lea.vmem %s15_s7, 32  ;;  %p92_p4 = scmp.lt.s32.totalorder %s15_s7, %s15_s7 }
   0x9   :  { %p88_p3 = scmp.ne.s32.totalorder %s15_s7, %s87_s15  ;;  %p93_p5 = scmp.lt.s32.totalorder %s87_s15, %s87_s15 }
   0xb   :  { %p94_p6 = por %p93_p5, %p92_p4 }
   0xd   :  { %p95_p7 = pnand %p94_p6, %p88_p3 }
   0xf   :  { %98 = shalt.err (!%p95_p7)
}
  0x10   :  { %17 = dma.hbm_to_vmem [thread:$0]  %s149_s0, 32, %s15_s7, [#allocation3]  }
  0x11   :  { %109 = dma.done.wait [#allocation3], 32  }
  0x12   :  { %110 = vsyncadd [#allocation3], 4294967264  ;;  %v21_v0 = vld [vmem:[#allocation2] sm:$0x3]  ;;  %vm42_vm1 = vcmask 8192   ;;  %s99_s20 = scalar_lea.hbm %s150_s1, 16 }
  0x13   :  { %v22_v1 = vmul.f32 %v21_v0, %v21_v0  ;;  %v24_v7 = vmul.f32 0.5, %v21_v0  ;;  %p100_p8 = scmp.ne.s32.totalorder %s150_s1, %s99_s20  ;;  %p103_p9 = scmp.lt.u32.totalorder %s99_s20, %s150_s1 }
  0x15   :  { %73 = vrcp.f32 %v22_v1  ;;  %v29_v2 = vadd.f32 1.0, %v22_v1  ;;  %v32_v3 = vmul.f32 -0.5, %v22_v1  ;;  %v35_v5 = vand.u32 2147483647, %v22_v1  ;;  %p105_p10 = pnand %p103_p9, %p100_p8 }
  0x17   :  { %75 = vlog2.f32 %v29_v2  ;;  %v33_v4 = vadd.f32 1.0, %v32_v3  ;;  %vm36_vm0 = vcmp.lt.f32.partialorder %v35_v5, 0.0004427343 }
  0x19   :  { %v34_v9 = vmul.f32 %v33_v4, %v22_v1 }
  0x1f   :  { %v74_v6 = vpop.eup %73 }
  0x20   :  { %v26_v8 = vrot.slane %v74_v6, 1 }
  0x21   :  { %v76_v10 = vpop.eup %75 }
  0x22   :  { %v31_v11 = vmul.f32 0.6931472, %v76_v10  ;;  %v28_v12 = vmul.f32 %v26_v8, %v24_v7 }
  0x24   :  { %v37_v13 = vsel %vm36_vm0, %v34_v9, %v31_v11 }
  0x25   :  { %v39_v14 = vrot.slane %v37_v13, 1 }
  0x27   :  { %v41_v15 = vadd.f32 %v39_v14, %v28_v12 }
  0x29   :  { %v43_v16 = vsel %vm42_vm1, %v41_v15, 0.0 }
  0x2a   :  { %44 = vadd.xlane.f32.xlu0 %v43_v16 }
  0xb7   :  { %v45_v17 = vpop.xlane.xlu0 %44 }
  0xb8   :  { %v46_v18 = vrot.slane %v45_v17, 4 }
  0xba   :  { %v47_v19 = vadd.f32 %v46_v18, %v45_v17 }
  0xbc   :  { %v48_v20 = vrot.slane %v47_v19, 2 }
  0xbe   :  { %v49_v21 = vadd.f32 %v48_v20, %v47_v19 }
  0xc0   :  { %v50_v22 = vrot.slane %v49_v21, 1 }
  0xc2   :  { %v51_v23 = vadd.f32 %v50_v22, %v49_v21 }
  0xc4   :  { %69 = vpush %v51_v23 }
  0xf5   :  { %s70_s0 = spop %69 }
  0xf6   :  { %54 = sst [smem:[#allocation5]] %s70_s0 }
  0xf7   :  { %108 = shalt.err (!%p105_p10)
}
  0xf8   :  { %s114_s25 = smov [#allocation5]  }
  0xf9   :  { %62 = dma.smem_to_hbm %s114_s25, 16, %s150_s1, [#allocation4]  }
  0xfa   :  { %111 = dma.done.wait [#allocation4], 16  }
  0xfb   :  { %112 = vsyncadd [#allocation4], 4294967280 }
  0xfc   :  { %66 = sfence }
  0xfd   :  { %67 = vsyncpa [#allocation3], 1 }
  0xfe   :  { %68 = vsyncpa [#allocation4], 1 }

</bundles_post_ra>
